<compile_context>
chip_gen: v7x
topology: tpu7x:2x2x1
jax: 0.10.0
libtpu: 0.0.40
codegen_flags: <defaults>
</compile_context>

<pallas_src>
import jax
import jax.numpy as jnp
from jax.experimental import pallas as pl
from jax.experimental.pallas import tpu as pltpu


def _make_dwconv_kernel(H, W):
    L = H * W

    def kernel(x_ref, w_ref, b_ref, o_ref):
        # x_ref: (rows, H*W) VMEM — each sublane row is one flattened (n, c) plane
        # w_ref: (rows, 9)   VMEM — per-row 3x3 taps, k = ky*3 + kx
        # b_ref: (rows, 1)   VMEM — per-row bias
        x = x_ref[...].astype(jnp.float32)
        w = w_ref[...].astype(jnp.float32)
        b = b_ref[...].astype(jnp.float32)
        rows = x.shape[0]

        # Border masks from the flat lane index; built once per kernel body.
        q = jax.lax.broadcasted_iota(jnp.int32, (rows, L), 1)
        if (W & (W - 1)) == 0:
            x_pos = q & (W - 1)          # column index inside each image row
        else:
            x_pos = q % W
        m_row = {-1: q >= W, 0: None, 1: q < (H - 1) * W}
        m_col = {-1: x_pos >= 1, 0: None, 1: x_pos <= W - 2}

        # Accumulator starts with bias + centre tap (ky=1, kx=1 -> k=4).
        acc = x * w[:, 4:5] + b

        for dr in (-1, 0, 1):
            for dc in (-1, 0, 1):
                if dr == 0 and dc == 0:
                    continue
                off = dr * W + dc        # flat-index offset of this tap
                # shifted[q] = x[q + off]  (lane roll stays within each plane row)
                shifted = pltpu.roll(x, shift=(-off) % L, axis=1)
                mask = m_row[dr]
                if m_col[dc] is not None:
                    mask = m_col[dc] if mask is None else (mask & m_col[dc])
                shifted = jnp.where(mask, shifted, 0.0)
                k = (dr + 1) * 3 + (dc + 1)
                acc = acc + w[:, k:k + 1] * shifted

        o_ref[...] = acc.astype(o_ref.dtype)

    return kernel


def depthwise_conv(x_nchw, weight, bias):
    """Depthwise conv2d, kernel=3, stride=1, padding=1, groups=C.

    x_nchw: (N, C, H, W)  float32
    weight: (C, 1, 3, 3)  float32  (PyTorch depthwise layout)
    bias:   (C,)          float32
    returns (N, C, H, W)  float32
    """
    N, C, H, W = x_nchw.shape
    R, L = N * C, H * W

    # Contiguous (free) reshapes/tiles in the wrapper — no transposes.
    x2d = x_nchw.reshape(R, L)
    w2d = jnp.tile(weight.reshape(C, 9).astype(jnp.float32), (N, 1))   # (R, 9)
    b2d = jnp.tile(bias.reshape(C, 1).astype(jnp.float32), (N, 1))     # (R, 1)

    # Single grid step normally; two parallel halves when each half keeps
    # 8-sublane alignment, so v7x's second TensorCore gets work.
    if R % 16 == 0:
        grid, rows_blk = (2,), R // 2
    else:
        grid, rows_blk = (1,), R

    itemsize = jnp.dtype(x_nchw.dtype).itemsize
    cost = pl.CostEstimate(
        flops=18 * N * C * H * W,
        transcendentals=0,
        bytes_accessed=2 * R * L * itemsize + 10 * R * 4,
    )

    out2d = pl.pallas_call(
        _make_dwconv_kernel(H, W),
        out_shape=jax.ShapeDtypeStruct((R, L), x_nchw.dtype),
        grid_spec=pltpu.PrefetchScalarGridSpec(
            num_scalar_prefetch=0,
            grid=grid,
            in_specs=[
                pl.BlockSpec((rows_blk, L), lambda g: (g, 0)),
                pl.BlockSpec((rows_blk, 9), lambda g: (g, 0)),
                pl.BlockSpec((rows_blk, 1), lambda g: (g, 0)),
            ],
            out_specs=pl.BlockSpec((rows_blk, L), lambda g: (g, 0)),
        ),
        compiler_params=pltpu.CompilerParams(
            dimension_semantics=("parallel",),
        ),
        cost_estimate=cost,
    )(x2d, w2d, b2d)

    return out2d.reshape(N, C, H, W)


def _reference(x_nchw, weight, bias):
    # Pure-JAX reference: grouped conv via lax.conv_general_dilated.
    C = x_nchw.shape[1]
    out = jax.lax.conv_general_dilated(
        x_nchw,
        weight,  # (C, 1, 3, 3) -> (O, I/groups, kH, kW)
        window_strides=(1, 1),
        padding=((1, 1), (1, 1)),
        feature_group_count=C,
        dimension_numbers=("NCHW", "OIHW", "NCHW"),
    )
    return out + bias.reshape(1, C, 1, 1)


if __name__ == "__main__":
    key = jax.random.PRNGKey(0)
    k_x, k_w, k_b = jax.random.split(key, 3)

    N, C, H, W = 2, 4, 16, 16
    x = jax.random.normal(k_x, (N, C, H, W), dtype=jnp.float32)
    # Deterministic synthetic parameters (shapes match nn.Conv2d(C, C, 3, groups=C))
    fan_in = 1 * 3 * 3
    bound = 1.0 / (fan_in ** 0.5)
    weight = jax.random.uniform(k_w, (C, 1, 3, 3), jnp.float32, -bound, bound)
    bias = jax.random.uniform(k_b, (C,), jnp.float32, -bound, bound)

    out = depthwise_conv(x, weight, bias)
    out = jax.block_until_ready(out)

    ref = _reference(x, weight, bias)
    assert out.shape == (N, C, H, W)
    assert jnp.allclose(out, ref, atol=1e-5, rtol=1e-5)

    print("KERNEL_OK")
</pallas_src>

<mosaic_0001>
module attributes {stable_mosaic.version = 11 : i64} {
  func.func @kernel(%arg0: i32, %arg1: memref<8x256xf32, #tpu.memory_space<vmem>>, %arg2: memref<8x9xf32, #tpu.memory_space<vmem>>, %arg3: memref<8x1xf32, #tpu.memory_space<vmem>>, %arg4: memref<8x256xf32, #tpu.memory_space<vmem>>) attributes {dimension_semantics = [#tpu.dimension_semantics<parallel>], iteration_bounds = array<i64: 1>, scalar_prefetch = 0 : i64, scratch_operands = 0 : i64, tpu.core_type = #tpu.core_type<tc>, window_params = [{transform_indices = @transform_0, window_bounds = array<i64: 8, 256>}, {transform_indices = @transform_1, window_bounds = array<i64: 8, 9>}, {transform_indices = @transform_2, window_bounds = array<i64: 8, 1>}, {transform_indices = @transform_3, window_bounds = array<i64: 8, 256>}]} {
    %c0 = arith.constant 0 : index
    %c0_0 = arith.constant 0 : index
    %0 = vector.load %arg1[%c0, %c0_0] : memref<8x256xf32, #tpu.memory_space<vmem>>, vector<8x256xf32>
    %c0_1 = arith.constant 0 : index
    %c0_2 = arith.constant 0 : index
    %1 = vector.load %arg2[%c0_1, %c0_2] : memref<8x9xf32, #tpu.memory_space<vmem>>, vector<8x9xf32>
    %c0_3 = arith.constant 0 : index
    %c0_4 = arith.constant 0 : index
    %2 = vector.load %arg3[%c0_3, %c0_4] : memref<8x1xf32, #tpu.memory_space<vmem>>, vector<8x1xf32>
    %3 = tpu.iota {dimensions = array<i32: 1>} : vector<8x256xi32>
    %c15_i32 = arith.constant 15 : i32
    %4 = vector.broadcast %c15_i32 : i32 to vector<8x256xi32>
    %5 = arith.andi %3, %4 : vector<8x256xi32>
    %c16_i32 = arith.constant 16 : i32
    %6 = vector.broadcast %c16_i32 : i32 to vector<8x256xi32>
    %7 = arith.cmpi sge, %3, %6 : vector<8x256xi32>
    %c240_i32 = arith.constant 240 : i32
    %8 = vector.broadcast %c240_i32 : i32 to vector<8x256xi32>
    %9 = arith.cmpi slt, %3, %8 : vector<8x256xi32>
    %c1_i32 = arith.constant 1 : i32
    %10 = vector.broadcast %c1_i32 : i32 to vector<8x256xi32>
    %11 = arith.cmpi sge, %5, %10 : vector<8x256xi32>
    %c14_i32 = arith.constant 14 : i32
    %12 = vector.broadcast %c14_i32 : i32 to vector<8x256xi32>
    %13 = arith.cmpi sle, %5, %12 : vector<8x256xi32>
    %14 = vector.extract_strided_slice %1 {offsets = [0, 4], sizes = [8, 1], strides = [1, 1]} : vector<8x9xf32> to vector<8x1xf32>
    %15 = vector.broadcast %14 : vector<8x1xf32> to vector<8x256xf32>
    %16 = arith.mulf %0, %15 : vector<8x256xf32>
    %17 = vector.broadcast %2 : vector<8x1xf32> to vector<8x256xf32>
    %18 = arith.addf %16, %17 : vector<8x256xf32>
    %c17_i32 = arith.constant 17 : i32
    %19 = tpu.dynamic_rotate %0 by %c17_i32 dim 1 : vector<8x256xf32>, i32 -> vector<8x256xf32>
    %20 = arith.andi %7, %11 : vector<8x256xi1>
    %cst = arith.constant 0.000000e+00 : f32
    %21 = vector.broadcast %cst : f32 to vector<8x256xf32>
    %22 = arith.select %20, %19, %21 : vector<8x256xi1>, vector<8x256xf32>
    %23 = vector.extract_strided_slice %1 {offsets = [0, 0], sizes = [8, 1], strides = [1, 1]} : vector<8x9xf32> to vector<8x1xf32>
    %24 = vector.broadcast %23 : vector<8x1xf32> to vector<8x256xf32>
    %25 = arith.mulf %24, %22 : vector<8x256xf32>
    %26 = arith.addf %18, %25 : vector<8x256xf32>
    %c16_i32_5 = arith.constant 16 : i32
    %27 = tpu.dynamic_rotate %0 by %c16_i32_5 dim 1 : vector<8x256xf32>, i32 -> vector<8x256xf32>
    %cst_6 = arith.constant 0.000000e+00 : f32
    %28 = vector.broadcast %cst_6 : f32 to vector<8x256xf32>
    %29 = arith.select %7, %27, %28 : vector<8x256xi1>, vector<8x256xf32>
    %30 = vector.extract_strided_slice %1 {offsets = [0, 1], sizes = [8, 1], strides = [1, 1]} : vector<8x9xf32> to vector<8x1xf32>
    %31 = vector.broadcast %30 : vector<8x1xf32> to vector<8x256xf32>
    %32 = arith.mulf %31, %29 : vector<8x256xf32>
    %33 = arith.addf %26, %32 : vector<8x256xf32>
    %c15_i32_7 = arith.constant 15 : i32
    %34 = tpu.dynamic_rotate %0 by %c15_i32_7 dim 1 : vector<8x256xf32>, i32 -> vector<8x256xf32>
    %35 = arith.andi %7, %13 : vector<8x256xi1>
    %cst_8 = arith.constant 0.000000e+00 : f32
    %36 = vector.broadcast %cst_8 : f32 to vector<8x256xf32>
    %37 = arith.select %35, %34, %36 : vector<8x256xi1>, vector<8x256xf32>
    %38 = vector.extract_strided_slice %1 {offsets = [0, 2], sizes = [8, 1], strides = [1, 1]} : vector<8x9xf32> to vector<8x1xf32>
    %39 = vector.broadcast %38 : vector<8x1xf32> to vector<8x256xf32>
    %40 = arith.mulf %39, %37 : vector<8x256xf32>
    %41 = arith.addf %33, %40 : vector<8x256xf32>
    %c1_i32_9 = arith.constant 1 : i32
    %42 = tpu.dynamic_rotate %0 by %c1_i32_9 dim 1 : vector<8x256xf32>, i32 -> vector<8x256xf32>
    %cst_10 = arith.constant 0.000000e+00 : f32
    %43 = vector.broadcast %cst_10 : f32 to vector<8x256xf32>
    %44 = arith.select %11, %42, %43 : vector<8x256xi1>, vector<8x256xf32>
    %45 = vector.extract_strided_slice %1 {offsets = [0, 3], sizes = [8, 1], strides = [1, 1]} : vector<8x9xf32> to vector<8x1xf32>
    %46 = vector.broadcast %45 : vector<8x1xf32> to vector<8x256xf32>
    %47 = arith.mulf %46, %44 : vector<8x256xf32>
    %48 = arith.addf %41, %47 : vector<8x256xf32>
    %c255_i32 = arith.constant 255 : i32
    %49 = tpu.dynamic_rotate %0 by %c255_i32 dim 1 : vector<8x256xf32>, i32 -> vector<8x256xf32>
    %cst_11 = arith.constant 0.000000e+00 : f32
    %50 = vector.broadcast %cst_11 : f32 to vector<8x256xf32>
    %51 = arith.select %13, %49, %50 : vector<8x256xi1>, vector<8x256xf32>
    %52 = vector.extract_strided_slice %1 {offsets = [0, 5], sizes = [8, 1], strides = [1, 1]} : vector<8x9xf32> to vector<8x1xf32>
    %53 = vector.broadcast %52 : vector<8x1xf32> to vector<8x256xf32>
    %54 = arith.mulf %53, %51 : vector<8x256xf32>
    %55 = arith.addf %48, %54 : vector<8x256xf32>
    %c241_i32 = arith.constant 241 : i32
    %56 = tpu.dynamic_rotate %0 by %c241_i32 dim 1 : vector<8x256xf32>, i32 -> vector<8x256xf32>
    %57 = arith.andi %9, %11 : vector<8x256xi1>
    %cst_12 = arith.constant 0.000000e+00 : f32
    %58 = vector.broadcast %cst_12 : f32 to vector<8x256xf32>
    %59 = arith.select %57, %56, %58 : vector<8x256xi1>, vector<8x256xf32>
    %60 = vector.extract_strided_slice %1 {offsets = [0, 6], sizes = [8, 1], strides = [1, 1]} : vector<8x9xf32> to vector<8x1xf32>
    %61 = vector.broadcast %60 : vector<8x1xf32> to vector<8x256xf32>
    %62 = arith.mulf %61, %59 : vector<8x256xf32>
    %63 = arith.addf %55, %62 : vector<8x256xf32>
    %c240_i32_13 = arith.constant 240 : i32
    %64 = tpu.dynamic_rotate %0 by %c240_i32_13 dim 1 : vector<8x256xf32>, i32 -> vector<8x256xf32>
    %cst_14 = arith.constant 0.000000e+00 : f32
    %65 = vector.broadcast %cst_14 : f32 to vector<8x256xf32>
    %66 = arith.select %9, %64, %65 : vector<8x256xi1>, vector<8x256xf32>
    %67 = vector.extract_strided_slice %1 {offsets = [0, 7], sizes = [8, 1], strides = [1, 1]} : vector<8x9xf32> to vector<8x1xf32>
    %68 = vector.broadcast %67 : vector<8x1xf32> to vector<8x256xf32>
    %69 = arith.mulf %68, %66 : vector<8x256xf32>
    %70 = arith.addf %63, %69 : vector<8x256xf32>
    %c239_i32 = arith.constant 239 : i32
    %71 = tpu.dynamic_rotate %0 by %c239_i32 dim 1 : vector<8x256xf32>, i32 -> vector<8x256xf32>
    %72 = arith.andi %9, %13 : vector<8x256xi1>
    %cst_15 = arith.constant 0.000000e+00 : f32
    %73 = vector.broadcast %cst_15 : f32 to vector<8x256xf32>
    %74 = arith.select %72, %71, %73 : vector<8x256xi1>, vector<8x256xf32>
    %75 = vector.extract_strided_slice %1 {offsets = [0, 8], sizes = [8, 1], strides = [1, 1]} : vector<8x9xf32> to vector<8x1xf32>
    %76 = vector.broadcast %75 : vector<8x1xf32> to vector<8x256xf32>
    %77 = arith.mulf %76, %74 : vector<8x256xf32>
    %78 = arith.addf %70, %77 : vector<8x256xf32>
    %c0_16 = arith.constant 0 : index
    %c0_17 = arith.constant 0 : index
    %79 = vector.load %arg4[%c0_16, %c0_17] : memref<8x256xf32, #tpu.memory_space<vmem>>, vector<8x256xf32>
    tpu.vector_store %arg4[%c0_16, %c0_17], %78 {strides = array<i32>} : memref<8x256xf32, #tpu.memory_space<vmem>>, vector<8x256xf32>,
    return
  }
  func.func @transform_0(%arg0: i32) -> (i32, i32) {
    %c0_i32 = arith.constant 0 : i32
    %c0_i32_0 = arith.constant 0 : i32
    return %arg0, %c0_i32 : i32, i32
  }
  func.func @transform_1(%arg0: i32) -> (i32, i32) {
    %c0_i32 = arith.constant 0 : i32
    %c0_i32_0 = arith.constant 0 : i32
    return %arg0, %c0_i32 : i32, i32
  }
  func.func @transform_2(%arg0: i32) -> (i32, i32) {
    %c0_i32 = arith.constant 0 : i32
    %c0_i32_0 = arith.constant 0 : i32
    return %arg0, %c0_i32 : i32, i32
  }
  func.func @transform_3(%arg0: i32) -> (i32, i32) {
    %c0_i32 = arith.constant 0 : i32
    %c0_i32_0 = arith.constant 0 : i32
    return %arg0, %c0_i32 : i32, i32
  }
}

</mosaic_0001>

<bundles_post_ra>
// kernel: tpu_custom_call.1
= control target key start
LH: loop header
LB: loop body
LE: loop exit
PB: predicated region body
PF: predicated region fallthrough
CT: control target
= control target key end

     0   :  { %8 = vsyncpa [#allocation3], 0  ;;  %s506_s0 = inlined_call_operand.hbm [shape: f32[8,256], index: 0, kind: input, shape index: {}]   ;;  %s507_s1 = inlined_call_operand.vmem [shape: f32[8,9], index: 1, kind: input, shape index: {}]   ;;  %s508_s2 = inlined_call_operand.vmem [shape: f32[8,1], index: 2, kind: input, shape index: {}]   ;;  %s509_s3 = inlined_call_operand.hbm [shape: f32[8,256], index: 3, kind: output, shape index: {}]  }
   0x1   :  { %9 = vsyncpa [#allocation4], 0  ;;  %s296_s12 = smov [#allocation2]   ;;  %s248_s16 = scalar_lea.hbm %s506_s0, 256 }
   0x2   :  { %s16_s13 = sshll.u32 %s296_s12, 4  ;;  %p249_p0 = scmp.ne.s32.totalorder %s506_s0, %s248_s16  ;;  %s17_s13 = int_to_ptr.vmem [resolvable:$true] %s16_s13 }
   0x3   :  { %p252_p1 = scmp.lt.u32.totalorder %s248_s16, %s506_s0 }
   0x5   :  { %p254_p2 = pnand %p252_p1, %p249_p0 }
   0x7   :  { %257 = shalt.err (!%p254_p2)
}
   0x8   :  { %s258_s21 = scalar_lea.vmem %s17_s13, 256  ;;  %p263_p4 = scmp.lt.s32.totalorder %s17_s13, %s17_s13 }
   0x9   :  { %p259_p3 = scmp.ne.s32.totalorder %s17_s13, %s258_s21  ;;  %p264_p5 = scmp.lt.s32.totalorder %s258_s21, %s258_s21 }
   0xb   :  { %p265_p6 = por %p264_p5, %p263_p4 }
   0xd   :  { %p266_p7 = pnand %p265_p6, %p259_p3 }
   0xf   :  { %269 = shalt.err (!%p266_p7)
}
  0x10   :  { %19 = dma.hbm_to_vmem [thread:$0]  %s506_s0, 256, %s17_s13, [#allocation3]  }
  0x11   :  { %292 = dma.done.wait [#allocation3], 256  }
  0x12   :  { %293 = vsyncadd [#allocation3], 4294967040  ;;  %v297_v0 = vmov 0   ;;  %v298_v1 = vmov 4   ;;  %v29_v2 = vld [vmem:[%s507_s1] sm:$0xff]  ;;  %v299_v4 = vmov 1   ;;  %v31_v23 = vlaneseq }
  0x13   :  { %240 = vset.pattern.permute.xlu1 %v297_v0  ;;  %238 = vset.pattern.permute.xlu0 %v298_v1  ;;  %v30_v3 = vld [vmem:[%s508_s2] sm:$0xff]  ;;  %v300_v6 = vmov 2   ;;  %s301_s0 = smov 17   ;;  %v302_v7 = vmov 3   ;;  %v356_v8 = vld [vmem:[#allocation2 + $0x8] sm:$0xff]  ;;  %v303_v9 = vmov 5  }
  0x14   :  { %70 = vperm.xlu1 %240, %v29_v2   ;;  %46 = vperm.xlu0 %238, %v29_v2   ;;  %v353_v5 = vld [vmem:[#allocation2] sm:$0xff]  ;;  %s304_s1 = smov 16   ;;  %v305_v10 = vmov 6   ;;  %s306_s2 = smov 15   ;;  %v307_v11 = vmov 7   ;;  %v308_v12 = vmov 8  }
  0x15   :  { %s309_s28 = smov 1   ;;  %s310_s29 = smov 112   ;;  %v377_v25 = vand.u32 127, %v31_v23 }
  0x16   :  { %s311_s30 = smov 111   ;;  %s312_s4 = smov 127  }
  0x17   :  { %s313_s5 = smov 113   ;;  %v382_v28 = vadd.s32 128, %v377_v25  ;;  %v34_v29 = vand.u32 15, %v377_v25  ;;  %vm36_vm0 = vcmp.ge.s32.totalorder %v377_v25, 16  ;;  %vm62_vm2 = vcmp.lt.s32.totalorder %v377_v25, 17  ;;  %s314_s6 = smov [#allocation5]  }
  0x18   :  { %241 = vset.pattern.permute.xlu1 %v299_v4  ;;  %239 = vset.pattern.permute.xlu0 %v297_v0  ;;  %vm81_vm3 = vcmp.lt.s32.totalorder %v377_v25, 16  ;;  %vm98_vm7 = vcmp.lt.s32.totalorder %v377_v25, 15  ;;  %vm117_vm8 = vcmp.lt.s32.totalorder %v377_v25, 1  ;;  %vm134_vm11 = vcmp.lt.s32.totalorder %v377_v25, 127  ;;  %s210_s7 = sshll.u32 %s314_s6, 4  ;;  %s211_s7 = int_to_ptr.vmem [resolvable:$true] %s210_s7 }
  0x19   :  { %87 = vperm.xlu1 %241, %v29_v2   ;;  %53 = vperm.xlu0 %239, %v30_v3   ;;  %v35_v32 = vand.u32 15, %v382_v28  ;;  %vm389_vm1 = vcmp.ge.s32.totalorder %v34_v29, 1  ;;  %vm407_vm6 = vcmp.le.s32.totalorder %v34_v29, 14  ;;  %vm39_vm12 = vcmp.lt.s32.totalorder %v382_v28, 240  ;;  %s270_s8 = scalar_lea.vmem %s211_s7, 256  ;;  %p275_p9 = scmp.lt.s32.totalorder %s211_s7, %s211_s7 }
  0x1a   :  { %vm399_vm4 = vmand %vm36_vm0, %vm389_vm1  ;;  %vm151_vm13 = vcmp.lt.s32.totalorder %v377_v25, 113  ;;  %vm170_vm15 = vcmp.lt.s32.totalorder %v377_v25, 112  ;;  %p271_p8 = scmp.ne.s32.totalorder %s211_s7, %s270_s8  ;;  %p276_p10 = scmp.lt.s32.totalorder %s270_s8, %s270_s8 }
  0x1b   :  { %vm403_vm5 = vcmp.ge.s32.totalorder %v35_v32, 1  ;;  %vm427_vm9 = vmand %vm36_vm0, %vm407_vm6  ;;  %vm433_vm10 = vcmp.le.s32.totalorder %v35_v32, 14 }
  0x1c   :  { %vm467_vm14 = vmand %vm39_vm12, %vm403_vm5  ;;  %p277_p11 = por %p276_p10, %p275_p9 }
  0x1d   :  { %242 = vset.pattern.permute.xlu1 %v300_v6  ;;  %58 = vrot.lane.b32.xlu0 %v353_v5, %s301_s0 }
  0x1e   :  { %106 = vperm.xlu1 %242, %v29_v2   ;;  %243 = vset.pattern.permute.xlu0 %v302_v7  ;;  %p278_p12 = pnand %p277_p11, %p271_p8 }
  0x21   :  { %123 = vperm.xlu0 %243, %v29_v2  }
  0x22   :  { %60 = vrot.lane.b32.xlu1 %v356_v8, %s301_s0 }
  0x25   :  { %244 = vset.pattern.permute.xlu0 %v303_v9 }
  0x26   :  { %77 = vrot.lane.b32.xlu1 %v353_v5, %s304_s1  ;;  %140 = vperm.xlu0 %244, %v29_v2  }
  0x2a   :  { %79 = vrot.lane.b32.xlu1 %v356_v8, %s304_s1  ;;  %245 = vset.pattern.permute.xlu0 %v305_v10 }
  0x2b   :  { %159 = vperm.xlu0 %245, %v29_v2  }
  0x2e   :  { %94 = vrot.lane.b32.xlu1 %v353_v5, %s306_s2 }
  0x2f   :  { %246 = vset.pattern.permute.xlu0 %v307_v11 }
  0x30   :  { %176 = vperm.xlu0 %246, %v29_v2  }
  0x32   :  { %96 = vrot.lane.b32.xlu1 %v356_v8, %s306_s2 }
  0x34   :  { %247 = vset.pattern.permute.xlu0 %v308_v12 }
  0x35   :  { %195 = vperm.xlu0 %247, %v29_v2  }
  0x36   :  { %113 = vrot.lane.b32.xlu1 %v353_v5, %s309_s28 }
  0x39   :  { %166 = vrot.lane.b32.xlu0 %v353_v5, %s310_s29 }
  0x3a   :  { %115 = vrot.lane.b32.xlu1 %v356_v8, %s309_s28 }
  0x3d   :  { %183 = vrot.lane.b32.xlu0 %v353_v5, %s311_s30 }
  0x3e   :  { %130 = vrot.lane.b32.xlu1 %v353_v5, %s312_s4 }
  0x42   :  { %132 = vrot.lane.b32.xlu1 %v356_v8, %s312_s4 }
  0x46   :  { %147 = vrot.lane.b32.xlu1 %v353_v5, %s313_s5 }
  0x4a   :  { %149 = vrot.lane.b32.xlu1 %v356_v8, %s313_s5 }
  0x4e   :  { %168 = vrot.lane.b32.xlu1 %v356_v8, %s310_s29 }
  0x52   :  { %185 = vrot.lane.b32.xlu1 %v356_v8, %s311_s30 }
  0x93   :  { %v71_v13 = vpop.permute.xlu1 %70  ;;  %v47_v15 = vpop.permute.xlu0 %46 }
  0x94   :  { %v49_v42 = vmul.f32 %v47_v15, %v353_v5  ;;  %v50_v44 = vmul.f32 %v47_v15, %v356_v8 }
  0x98   :  { %v88_v14 = vpop.permute.xlu1 %87  ;;  %v54_v17 = vpop.permute.xlu0 %53 }
  0x99   :  { %v56_v53 = vadd.f32 %v54_v17, %v49_v42  ;;  %v57_v57 = vadd.f32 %v54_v17, %v50_v44 }
  0x9c   :  { %v59_v20 = vpop.permute.xlu0 %58 }
  0x9d   :  { %v373_v16 = vpop.permute.xlu1 %106 }
  0xa0   :  { %v375_v22 = vpop.permute.xlu0 %123 }
  0xa1   :  { %v61_v18 = vpop.permute.xlu1 %60 }
  0xa2   :  { %v64_v36 = vsel %vm62_vm2, %v61_v18, %v59_v20  ;;  %v63_v38 = vsel %vm62_vm2, %v59_v20, %v61_v18 }
  0xa3   :  { %v67_v45 = vsel %vm399_vm4, %v64_v36, 0.0  ;;  %v68_v46 = vsel %vm403_vm5, %v63_v38, 0.0 }
  0xa4   :  { %v73_v54 = vmul.f32 %v71_v13, %v67_v45  ;;  %v74_v58 = vmul.f32 %v71_v13, %v68_v46 }
  0xa5   :  { %v78_v19 = vpop.permute.xlu1 %77  ;;  %v379_v27 = vpop.permute.xlu0 %140 }
  0xa6   :  { %v75_v4 = vadd.f32 %v73_v54, %v56_v53  ;;  %v76_v8 = vadd.f32 %v74_v58, %v57_v57 }
  0xa9   :  { %v80_v21 = vpop.permute.xlu1 %79 }
  0xaa   :  { %v385_v31 = vpop.permute.xlu0 %159  ;;  %v83_v43 = vsel %vm81_vm3, %v80_v21, %v78_v19  ;;  %v82_v55 = vsel %vm81_vm3, %v78_v19, %v80_v21 }
  0xab   :  { %v84_v49 = vsel %vm36_vm0, %v83_v43, 0.0  ;;  %v91_v1 = vmul.f32 %v88_v14, %v82_v55  ;;  %vm187_vm0 = vcmp.lt.s32.totalorder %v377_v25, 111 }
  0xac   :  { %v90_v62 = vmul.f32 %v88_v14, %v84_v49 }
  0xad   :  { %v95_v24 = vpop.permute.xlu1 %94  ;;  %v93_v14 = vadd.f32 %v91_v1, %v76_v8 }
  0xae   :  { %v92_v11 = vadd.f32 %v90_v62, %v75_v4 }
  0xaf   :  { %v412_v41 = vpop.permute.xlu0 %176 }
  0xb1   :  { %v97_v26 = vpop.permute.xlu1 %96 }
  0xb2   :  { %v100_v48 = vsel %vm98_vm7, %v97_v26, %v95_v24  ;;  %v99_v51 = vsel %vm98_vm7, %v95_v24, %v97_v26 }
  0xb3   :  { %v103_v59 = vsel %vm427_vm9, %v100_v48, 0.0  ;;  %v104_v63 = vsel %vm433_vm10, %v99_v51, 0.0 }
  0xb4   :  { %v196_v61 = vpop.permute.xlu0 %195  ;;  %v109_v5 = vmul.f32 %v373_v16, %v103_v59  ;;  %v110_v9 = vmul.f32 %v373_v16, %v104_v63 }
  0xb5   :  { %v114_v30 = vpop.permute.xlu1 %113 }
  0xb6   :  { %v111_v19 = vadd.f32 %v109_v5, %v92_v11  ;;  %v112_v24 = vadd.f32 %v110_v9, %v93_v14 }
  0xb8   :  { %v167_v18 = vpop.permute.xlu0 %166 }
  0xb9   :  { %v116_v34 = vpop.permute.xlu1 %115 }
  0xba   :  { %v119_v56 = vsel %vm117_vm8, %v116_v34, %v114_v30  ;;  %v118_v60 = vsel %vm117_vm8, %v114_v30, %v116_v34 }
  0xbb   :  { %v120_v2 = vsel %vm389_vm1, %v119_v56, 0.0  ;;  %v121_v6 = vsel %vm403_vm5, %v118_v60, 0.0 }
  0xbc   :  { %v126_v12 = vmul.f32 %v375_v22, %v120_v2  ;;  %v127_v15 = vmul.f32 %v375_v22, %v121_v6  ;;  %v184_v42 = vpop.permute.xlu0 %183 }
  0xbd   :  { %v131_v40 = vpop.permute.xlu1 %130 }
  0xbe   :  { %v128_v22 = vadd.f32 %v126_v12, %v111_v19  ;;  %v129_v34 = vadd.f32 %v127_v15, %v112_v24 }
  0xc1   :  { %v133_v52 = vpop.permute.xlu1 %132 }
  0xc2   :  { %v135_v0 = vsel %vm134_vm11, %v131_v40, %v133_v52  ;;  %v136_v7 = vsel %vm134_vm11, %v133_v52, %v131_v40 }
  0xc3   :  { %v137_v10 = vsel %vm407_vm6, %v135_v0, 0.0  ;;  %v138_v16 = vsel %vm433_vm10, %v136_v7, 0.0 }
  0xc4   :  { %v143_v20 = vmul.f32 %v379_v27, %v137_v10  ;;  %v144_v30 = vmul.f32 %v379_v27, %v138_v16 }
  0xc5   :  { %v148_v3 = vpop.permute.xlu1 %147 }
  0xc6   :  { %v145_v36 = vadd.f32 %v143_v20, %v128_v22  ;;  %v146_v43 = vadd.f32 %v144_v30, %v129_v34 }
  0xc9   :  { %v150_v17 = vpop.permute.xlu1 %149 }
  0xca   :  { %v152_v21 = vsel %vm151_vm13, %v148_v3, %v150_v17  ;;  %v153_v23 = vsel %vm151_vm13, %v150_v17, %v148_v3 }
  0xcb   :  { %v156_v26 = vsel %vm389_vm1, %v152_v21, 0.0  ;;  %v157_v29 = vsel %vm467_vm14, %v153_v23, 0.0  ;;  %vm191_vm1 = vmand %vm39_vm12, %vm433_vm10 }
  0xcc   :  { %v162_v32 = vmul.f32 %v385_v31, %v156_v26  ;;  %v163_v37 = vmul.f32 %v385_v31, %v157_v29 }
  0xcd   :  { %v169_v35 = vpop.permute.xlu1 %168 }
  0xce   :  { %v171_v38 = vsel %vm170_vm15, %v167_v18, %v169_v35  ;;  %v172_v40 = vsel %vm170_vm15, %v169_v35, %v167_v18  ;;  %v164_v44 = vadd.f32 %v162_v32, %v145_v36  ;;  %v165_v46 = vadd.f32 %v163_v37, %v146_v43 }
  0xcf   :  { %v174_v33 = vsel %vm39_vm12, %v172_v40, 0.0  ;;  %v179_v45 = vmul.f32 %v412_v41, %v171_v38 }
  0xd0   :  { %v180_v27 = vmul.f32 %v412_v41, %v174_v33 }
  0xd1   :  { %v186_v31 = vpop.permute.xlu1 %185  ;;  %v181_v51 = vadd.f32 %v179_v45, %v164_v44 }
  0xd2   :  { %v188_v47 = vsel %vm187_vm0, %v184_v42, %v186_v31  ;;  %v189_v48 = vsel %vm187_vm0, %v186_v31, %v184_v42  ;;  %v182_v52 = vadd.f32 %v180_v27, %v165_v46 }
  0xd3   :  { %v192_v49 = vsel %vm407_vm6, %v188_v47, 0.0  ;;  %v193_v25 = vsel %vm191_vm1, %v189_v48, 0.0 }
  0xd4   :  { %v198_v53 = vmul.f32 %v196_v61, %v192_v49  ;;  %v199_v54 = vmul.f32 %v196_v61, %v193_v25 }
  0xd6   :  { %v200_v41 = vadd.f32 %v198_v53, %v181_v51  ;;  %v201_v55 = vadd.f32 %v199_v54, %v182_v52 }
  0xd8   :  { %202 = vst [vmem:[#allocation5] sm:$0xff] %v200_v41  ;;  %203 = vst [vmem:[#allocation5 + $0x8] sm:$0xff] %v201_v55 }
  0xd9   :  { %281 = shalt.err (!%p278_p12)
}
  0xda   :  { %s282_s11 = scalar_lea.hbm %s509_s3, 256 }
  0xdb   :  { %p283_p13 = scmp.ne.s32.totalorder %s509_s3, %s282_s11  ;;  %p286_p0 = scmp.lt.u32.totalorder %s282_s11, %s509_s3 }
  0xdd   :  { %p288_p1 = pnand %p286_p0, %p283_p13 }
  0xdf   :  { %291 = shalt.err (!%p288_p1)
}
  0xe0   :  { %213 = dma.vmem_to_hbm [thread:$0]  %s211_s7, 256, %s509_s3, [#allocation4]  }
  0xe1   :  { %294 = dma.done.wait [#allocation4], 256  }
  0xe2   :  { %295 = vsyncadd [#allocation4], 4294967040 }
  0xe3   :  { %217 = vsyncpa [#allocation3], 1 }
  0xe4   :  { %218 = vsyncpa [#allocation4], 1 }

</bundles_post_ra>
